<compile_context>
chip_gen: v7x
topology: tpu7x:2x2x1
jax: 0.10.0
libtpu: 0.0.40
codegen_flags: <defaults>
</compile_context>

<pallas_src>
import jax
import jax.numpy as jnp
from jax.experimental import pallas as pl
from jax.experimental.pallas import tpu as pltpu

_LANES = 128
_SAMPLES_PER_ROW = _LANES // 2  # 64 samples packed per lane-dense row


def mlp_clf_kernel(coef_ref, x_ref, o_ref):
    # x_ref: (TILE_ROWS, 128) f32, features interleaved on lanes
    #        (lane 2k = sample-k feature0, lane 2k+1 = sample-k feature1).
    # coef_ref: (8, 128) f32 per-lane coefficients:
    #   row0 wa  : coeff of x itself           (even lanes Wc00, odd lanes Wc11)
    #   row1 wbe : coeff of lane-(i+1) partner (even lanes Wc01, odd lanes 0)
    #   row2 wbo : coeff of lane-(i-1) partner (even lanes 0,    odd lanes Wc10)
    #   row3 b   : bias                        (even lanes bc0,  odd lanes bc1)
    x = x_ref[...]
    coef = coef_ref[...]
    wa = coef[0:1, :]
    wbe = coef[1:2, :]
    wbo = coef[2:3, :]
    b = coef[3:4, :]

    # Lane-partner gathers on the XLU (shift 127 == -1 mod 128 => lane i sees
    # lane i+1).  Wraparound lanes (0 and 127) are harmless because the
    # opposite-parity coefficient is zeroed.
    x_next = pltpu.roll(x, shift=_LANES - 1, axis=1)  # even lanes get f1 partner
    x_prev = pltpu.roll(x, shift=1, axis=1)           # odd  lanes get f0 partner

    o_ref[...] = x * wa + x_next * wbe + x_prev * wbo + b


def mlp_clf_forward(x, w1, b1, w2, b2, *, tile_rows=8192):
    """x: (B, ...) flattened to (B, 2); returns (B, 2) f32."""
    B = x.shape[0]
    x2 = x.reshape(B, -1).astype(jnp.float32)
    assert x2.shape[1] == 2, "MLP_clf expects 2 input features after flatten"

    w1 = w1.astype(jnp.float32)
    b1 = b1.astype(jnp.float32)
    w2 = w2.astype(jnp.float32)
    b2 = b2.astype(jnp.float32)

    # Fold the two affine layers (no activation between them): y = x @ Wc.T + bc
    wc = w2 @ w1                  # (2, 2)
    bc = b1 @ w2.T + b2           # (2,)

    # ---- lane-dense layout --------------------------------------------------
    # Pad ONLY up to a multiple of 64 samples (< one lane-row).  When
    # B % 64 == 0 this is a zero-copy reshape: no pad, no trailing slice.
    pad = (-B) % _SAMPLES_PER_ROW
    x_pad = x2 if pad == 0 else jnp.pad(x2, ((0, pad), (0, 0)))
    rows = (B + pad) // _SAMPLES_PER_ROW
    x_lanes = x_pad.reshape(rows, _LANES)

    # Tile size: multiple of 8 sublanes, clamped to the (rounded-up) row count.
    # The grid uses cdiv; the last block may overhang and Pallas masks its
    # out-of-bounds writeback.
    tile_rows = max(8, (int(tile_rows) // 8) * 8)
    tile_rows = min(tile_rows, ((rows + 7) // 8) * 8)
    grid = (pl.cdiv(rows, tile_rows),)

    # ---- per-lane coefficient vectors (host-side, tiny) ----
    lane = jnp.arange(_LANES)
    even = (lane % 2) == 0
    coef = (
        jnp.zeros((8, _LANES), jnp.float32)
        .at[0].set(jnp.where(even, wc[0, 0], wc[1, 1]))
        .at[1].set(jnp.where(even, wc[0, 1], 0.0))
        .at[2].set(jnp.where(even, 0.0, wc[1, 0]))
        .at[3].set(jnp.where(even, bc[0], bc[1]))
    )

    out_lanes = pl.pallas_call(
        mlp_clf_kernel,
        out_shape=jax.ShapeDtypeStruct((rows, _LANES), jnp.float32),
        grid=grid,
        in_specs=[
            pl.BlockSpec((8, _LANES), lambda i: (0, 0)),          # coefficients (constant)
            pl.BlockSpec((tile_rows, _LANES), lambda i: (i, 0)),  # batch tile
        ],
        out_specs=pl.BlockSpec((tile_rows, _LANES), lambda i: (i, 0)),
        compiler_params=pltpu.CompilerParams(
            dimension_semantics=("parallel",),
            vmem_limit_bytes=32 * 1024 * 1024,
        ),
    )(coef, x_lanes)

    out = out_lanes.reshape(rows * _SAMPLES_PER_ROW, 2)
    return out if pad == 0 else out[:B]  # ragged tail only: slice off pad rows


def _ref_forward(x, w1, b1, w2, b2):
    x2 = x.reshape(x.shape[0], -1).astype(jnp.float32)
    h = x2 @ w1.T + b1
    return h @ w2.T + b2


if __name__ == "__main__":
    key = jax.random.PRNGKey(0)
    kx, k1, k2, k3, k4 = jax.random.split(key, 5)

    # PyTorch Linear parameter shapes: weight (out, in), bias (out,)
    bound = 1.0 / jnp.sqrt(2.0)
    w1 = jax.random.uniform(k1, (2, 2), jnp.float32, -bound, bound)
    b1 = jax.random.uniform(k2, (2,), jnp.float32, -bound, bound)
    w2 = jax.random.uniform(k3, (2, 2), jnp.float32, -bound, bound)
    b2 = jax.random.uniform(k4, (2,), jnp.float32, -bound, bound)

    # 1) Ragged batch (not a multiple of 64): exercises the minimal-pad path.
    B1 = 1027
    x1 = jax.random.normal(kx, (B1, 2), dtype=jnp.float32)
    ref1 = _ref_forward(x1, w1, b1, w2, b2)
    out1 = jax.block_until_ready(mlp_clf_forward(x1, w1, b1, w2, b2))
    assert out1.shape == (B1, 2)
    assert jnp.allclose(out1, ref1, atol=1e-5, rtol=1e-5), "mismatch (ragged)"

    # 2) Same batch, tiny tile: forces grid > 1 and an overhanging last block.
    out1t = jax.block_until_ready(mlp_clf_forward(x1, w1, b1, w2, b2, tile_rows=8))
    assert jnp.allclose(out1t, ref1, atol=1e-5, rtol=1e-5), "mismatch (tiled)"

    # 3) Batch that is a multiple of 64: zero-copy (no pad, no slice) path.
    B2 = 512
    x2 = jax.random.normal(kx, (B2, 2), dtype=jnp.float32)
    ref2 = _ref_forward(x2, w1, b1, w2, b2)
    out2 = jax.block_until_ready(mlp_clf_forward(x2, w1, b1, w2, b2))
    assert out2.shape == (B2, 2)
    assert jnp.allclose(out2, ref2, atol=1e-5, rtol=1e-5), "mismatch (zero-copy)"

    print("KERNEL_OK")
</pallas_src>

<mosaic_0001>
module attributes {stable_mosaic.version = 11 : i64} {
  func.func @mlp_clf_kernel(%arg0: i32, %arg1: memref<8x128xf32, #tpu.memory_space<vmem>>, %arg2: memref<24x128xf32, #tpu.memory_space<vmem>>, %arg3: memref<24x128xf32, #tpu.memory_space<vmem>>) attributes {dimension_semantics = [#tpu.dimension_semantics<parallel>], iteration_bounds = array<i64: 1>, scalar_prefetch = 0 : i64, scratch_operands = 0 : i64, tpu.core_type = #tpu.core_type<tc>, window_params = [{pipeline_mode = #tpu.pipeline_mode<synchronous>, transform_indices = @transform_0, window_bounds = array<i64: 8, 128>}, {transform_indices = @transform_1, window_bounds = array<i64: 24, 128>}, {transform_indices = @transform_2, window_bounds = array<i64: 24, 128>}]} {
    %c0 = arith.constant 0 : index
    %c0_0 = arith.constant 0 : index
    %0 = vector.load %arg2[%c0, %c0_0] : memref<24x128xf32, #tpu.memory_space<vmem>>, vector<24x128xf32>
    %c0_1 = arith.constant 0 : index
    %c0_2 = arith.constant 0 : index
    %1 = vector.load %arg1[%c0_1, %c0_2] : memref<8x128xf32, #tpu.memory_space<vmem>>, vector<8x128xf32>
    %2 = vector.extract_strided_slice %1 {offsets = [0, 0], sizes = [1, 128], strides = [1, 1]} : vector<8x128xf32> to vector<1x128xf32>
    %3 = vector.extract_strided_slice %1 {offsets = [1, 0], sizes = [1, 128], strides = [1, 1]} : vector<8x128xf32> to vector<1x128xf32>
    %4 = vector.extract_strided_slice %1 {offsets = [2, 0], sizes = [1, 128], strides = [1, 1]} : vector<8x128xf32> to vector<1x128xf32>
    %5 = vector.extract_strided_slice %1 {offsets = [3, 0], sizes = [1, 128], strides = [1, 1]} : vector<8x128xf32> to vector<1x128xf32>
    %c127_i32 = arith.constant 127 : i32
    %6 = tpu.dynamic_rotate %0 by %c127_i32 dim 1 : vector<24x128xf32>, i32 -> vector<24x128xf32>
    %c1_i32 = arith.constant 1 : i32
    %7 = tpu.dynamic_rotate %0 by %c1_i32 dim 1 : vector<24x128xf32>, i32 -> vector<24x128xf32>
    %8 = vector.broadcast %2 : vector<1x128xf32> to vector<24x128xf32>
    %9 = arith.mulf %0, %8 : vector<24x128xf32>
    %10 = vector.broadcast %3 : vector<1x128xf32> to vector<24x128xf32>
    %11 = arith.mulf %6, %10 : vector<24x128xf32>
    %12 = arith.addf %9, %11 : vector<24x128xf32>
    %13 = vector.broadcast %4 : vector<1x128xf32> to vector<24x128xf32>
    %14 = arith.mulf %7, %13 : vector<24x128xf32>
    %15 = arith.addf %12, %14 : vector<24x128xf32>
    %16 = vector.broadcast %5 : vector<1x128xf32> to vector<24x128xf32>
    %17 = arith.addf %15, %16 : vector<24x128xf32>
    %c0_3 = arith.constant 0 : index
    %c0_4 = arith.constant 0 : index
    %18 = vector.load %arg3[%c0_3, %c0_4] : memref<24x128xf32, #tpu.memory_space<vmem>>, vector<24x128xf32>
    tpu.vector_store %arg3[%c0_3, %c0_4], %17 {strides = array<i32>} : memref<24x128xf32, #tpu.memory_space<vmem>>, vector<24x128xf32>,
    return
  }
  func.func @transform_0(%arg0: i32) -> (i32, i32) {
    %c0_i32 = arith.constant 0 : i32
    %c0_i32_0 = arith.constant 0 : i32
    %c0_i32_1 = arith.constant 0 : i32
    return %c0_i32, %c0_i32_0 : i32, i32
  }
  func.func @transform_1(%arg0: i32) -> (i32, i32) {
    %c0_i32 = arith.constant 0 : i32
    %c0_i32_0 = arith.constant 0 : i32
    return %arg0, %c0_i32 : i32, i32
  }
  func.func @transform_2(%arg0: i32) -> (i32, i32) {
    %c0_i32 = arith.constant 0 : i32
    %c0_i32_0 = arith.constant 0 : i32
    return %arg0, %c0_i32 : i32, i32
  }
}

</mosaic_0001>

<bundles_post_ra>
// kernel: tpu_custom_call.1
= control target key start
LH: loop header
LB: loop body
LE: loop exit
PB: predicated region body
PF: predicated region fallthrough
CT: control target
= control target key end

     0   :  { %7 = vsyncpa [#allocation3], 0  ;;  %s259_s0 = inlined_call_operand.hbm [shape: f32[8,128], index: 0, kind: input, shape index: {}]   ;;  %s260_s1 = inlined_call_operand.hbm [shape: f32[17,128], index: 1, kind: input, shape index: {}]   ;;  %s261_s2 = inlined_call_operand.hbm [shape: f32[17,128], index: 2, kind: output, shape index: {}]  }
   0x1   :  { %8 = vsyncpa [#allocation6], 0 }
   0x2   :  { %9 = vsyncpa [#allocation4], 0  ;;  %s188_s9 = smov [#allocation2]   ;;  %s189_s11 = smov [#allocation5]  }
   0x3   :  { %s16_s10 = sshll.u32 %s188_s9, 4  ;;  %s25_s12 = sshll.u32 %s189_s11, 4  ;;  %s17_s10 = int_to_ptr.vmem [resolvable:$true] %s16_s10  ;;  %s210_s12 = int_to_ptr.vmem [resolvable:$true] %s25_s12 }
   0x4   :  { %s116_s15 = scalar_lea.hbm %s259_s0, 128 }
   0x5   :  { %p117_p0 = scmp.ne.s32.totalorder %s259_s0, %s116_s15  ;;  %p120_p1 = scmp.lt.u32.totalorder %s116_s15, %s259_s0 }
   0x7   :  { %p122_p2 = pnand %p120_p1, %p117_p0 }
   0x9   :  { %125 = shalt.err (!%p122_p2)
}
   0xa   :  { %s126_s20 = scalar_lea.vmem %s17_s10, 128  ;;  %p131_p4 = scmp.lt.s32.totalorder %s17_s10, %s17_s10 }
   0xb   :  { %p127_p3 = scmp.ne.s32.totalorder %s17_s10, %s126_s20  ;;  %p132_p5 = scmp.lt.s32.totalorder %s126_s20, %s126_s20 }
   0xd   :  { %p133_p6 = por %p132_p5, %p131_p4 }
   0xf   :  { %p134_p7 = pnand %p133_p6, %p127_p3 }
  0x11   :  { %137 = shalt.err (!%p134_p7)
}
  0x12   :  { %19 = dma.hbm_to_vmem [thread:$0]  %s259_s0, 128, %s17_s10, [#allocation3]  }
  0x13   :  { %s138_s25 = scalar_lea.hbm %s260_s1, 384 }
  0x14   :  { %p139_p8 = scmp.ne.s32.totalorder %s260_s1, %s138_s25  ;;  %p142_p9 = scmp.lt.u32.totalorder %s138_s25, %s260_s1 }
  0x16   :  { %p144_p10 = pnand %p142_p9, %p139_p8 }
  0x18   :  { %147 = shalt.err (!%p144_p10)
}
  0x19   :  { %s148_s30 = scalar_lea.vmem %s210_s12, 384  ;;  %p153_p12 = scmp.lt.s32.totalorder %s210_s12, %s210_s12 }
  0x1a   :  { %p149_p11 = scmp.ne.s32.totalorder %s210_s12, %s148_s30  ;;  %p154_p13 = scmp.lt.s32.totalorder %s148_s30, %s148_s30 }
  0x1c   :  { %p155_p0 = por %p154_p13, %p153_p12 }
  0x1e   :  { %p156_p1 = pnand %p155_p0, %p149_p11 }
  0x20   :  { %159 = shalt.err (!%p156_p1)
}
  0x21   :  { %s190_s0 = smov 128   ;;  %s191_s3 = smov 8  }
  0x22   :  { %31 = dma.hbm_to_vmem [thread:$0]  %s260_s1, 384, %s210_s12, [#allocation6], %s190_s0, %s190_s0, %s191_s3  }
  0x23   :  { %182 = dma.done.wait [#allocation3], 128  }
  0x24   :  { %183 = vsyncadd [#allocation3], 4294967168 }
  0x25   :  { %184 = dma.done.wait [#allocation6], 384  }
  0x26   :  { %185 = vsyncadd [#allocation6], 4294966912  ;;  %v40_v0 = vld [vmem:[#allocation5 + $0x10] sm:$0xff]  ;;  %v38_v1 = vld [vmem:[#allocation5] sm:$0xff]  ;;  %s192_s6 = smov 127   ;;  %s193_s7 = smov 1   ;;  %v54_v3 = vlaneseq }
  0x27   :  { %46 = vrot.lane.b32.xlu1 %v40_v0, %s192_s6  ;;  %42 = vrot.lane.b32.xlu0 %v38_v1, %s192_s6  ;;  %v39_v2 = vld [vmem:[#allocation5 + $0x8] sm:$0xff]  ;;  %v41_v7 = vld [vmem:[#allocation2] sm:$0xff]  ;;  %s194_s1 = smov [#allocation7]  }
  0x28   :  { %v55_v4 = vshrl.u32 %v54_v3, 7  ;;  %s96_s8 = sshll.u32 %s194_s1, 4  ;;  %s97_s8 = int_to_ptr.vmem [resolvable:$true] %s96_s8 }
  0x29   :  { %s160_s9 = scalar_lea.vmem %s97_s8, 384  ;;  %p165_p3 = scmp.lt.s32.totalorder %s97_s8, %s97_s8 }
  0x2a   :  { %v56_v5 = vsub.s32 0, %v55_v4  ;;  %v63_v6 = vsub.s32 1, %v55_v4  ;;  %v73_v10 = vsub.s32 2, %v55_v4  ;;  %v83_v13 = vsub.s32 3, %v55_v4  ;;  %p161_p2 = scmp.ne.s32.totalorder %s97_s8, %s160_s9  ;;  %p166_p4 = scmp.lt.s32.totalorder %s160_s9, %s160_s9 }
  0x2b   :  { %48 = vrot.lane.b32.xlu1 %v38_v1, %s193_s7  ;;  %44 = vrot.lane.b32.xlu0 %v39_v2, %s192_s6 }
  0x2c   :  { %v57_v8 = vrot.slane %v41_v7, %v56_v5  ;;  %v64_v9 = vrot.slane %v41_v7, %v63_v6  ;;  %v74_v16 = vrot.slane %v41_v7, %v73_v10  ;;  %v84_v19 = vrot.slane %v41_v7, %v83_v13  ;;  %p167_p5 = por %p166_p4, %p165_p3 }
  0x2e   :  { %v58_v14 = vmul.f32 %v57_v8, %v38_v1  ;;  %v60_v17 = vmul.f32 %v57_v8, %v40_v0  ;;  %v59_v22 = vmul.f32 %v57_v8, %v39_v2  ;;  %p168_p6 = pnand %p167_p5, %p161_p2 }
  0x2f   :  { %52 = vrot.lane.b32.xlu1 %v40_v0, %s193_s7  ;;  %50 = vrot.lane.b32.xlu0 %v39_v2, %s193_s7 }
  0x99   :  { %v47_v11 = vpop.permute.xlu1 %46  ;;  %v43_v12 = vpop.permute.xlu0 %42 }
  0x9a   :  { %v65_v15 = vmul.f32 %v64_v9, %v43_v12  ;;  %v67_v18 = vmul.f32 %v64_v9, %v47_v11 }
  0x9c   :  { %v68_v23 = vadd.f32 %v65_v15, %v58_v14  ;;  %v70_v27 = vadd.f32 %v67_v18, %v60_v17 }
  0x9d   :  { %v49_v20 = vpop.permute.xlu1 %48  ;;  %v45_v21 = vpop.permute.xlu0 %44 }
  0x9e   :  { %v75_v24 = vmul.f32 %v74_v16, %v49_v20  ;;  %v66_v25 = vmul.f32 %v64_v9, %v45_v21 }
  0xa0   :  { %v78_v26 = vadd.f32 %v75_v24, %v68_v23  ;;  %v69_v31 = vadd.f32 %v66_v25, %v59_v22 }
  0xa1   :  { %v53_v28 = vpop.permute.xlu1 %52  ;;  %v51_v29 = vpop.permute.xlu0 %50 }
  0xa2   :  { %v85_v30 = vadd.f32 %v84_v19, %v78_v26  ;;  %v77_v32 = vmul.f32 %v74_v16, %v53_v28  ;;  %v76_v33 = vmul.f32 %v74_v16, %v51_v29 }
  0xa4   :  { %88 = vst [vmem:[#allocation7] sm:$0xff] %v85_v30  ;;  %v80_v34 = vadd.f32 %v77_v32, %v70_v27  ;;  %v79_v35 = vadd.f32 %v76_v33, %v69_v31 }
  0xa6   :  { %v87_v36 = vadd.f32 %v84_v19, %v80_v34  ;;  %v86_v37 = vadd.f32 %v84_v19, %v79_v35 }
  0xa8   :  { %90 = vst [vmem:[#allocation7 + $0x10] sm:$0xff] %v87_v36  ;;  %89 = vst [vmem:[#allocation7 + $0x8] sm:$0xff] %v86_v37 }
  0xa9   :  { %171 = shalt.err (!%p168_p6)
}
  0xaa   :  { %s172_s12 = scalar_lea.hbm %s261_s2, 384 }
  0xab   :  { %p173_p7 = scmp.ne.s32.totalorder %s261_s2, %s172_s12  ;;  %p176_p8 = scmp.lt.u32.totalorder %s172_s12, %s261_s2 }
  0xad   :  { %p178_p9 = pnand %p176_p8, %p173_p7 }
  0xaf   :  { %181 = shalt.err (!%p178_p9)
}
  0xb0   :  { %102 = dma.vmem_to_hbm [thread:$0]  %s97_s8, 384, %s261_s2, [#allocation4], %s190_s0, %s190_s0, %s191_s3  }
  0xb1   :  { %186 = dma.done.wait [#allocation4], 384  }
  0xb2   :  { %187 = vsyncadd [#allocation4], 4294966912 }
  0xb3   :  { %106 = vsyncpa [#allocation3], 1 }
  0xb4   :  { %107 = vsyncpa [#allocation6], 1 }
  0xb5   :  { %108 = vsyncpa [#allocation4], 1 }

</bundles_post_ra>
